<compile_context>
chip_gen: v7x
topology: tpu7x:2x2x1
jax: 0.10.0
libtpu: 0.0.40
codegen_flags: <defaults>
</compile_context>

<pallas_src>
import functools

import jax
import jax.numpy as jnp
from jax import lax
from jax.experimental import pallas as pl
from jax.experimental.pallas import tpu as pltpu


def _round_up(x, m):
    return (x + m - 1) // m * m


def _patch_embed_kernel(p_ref, w_ref, b_ref, g_ref, beta_ref, o_ref, *,
                        inv_e, pad_lanes):
    # p_ref:   (TM, K_pad)     patch vectors (bf16 or f32), zero-padded K cols
    # w_ref:   (K_pad, E_pad)  conv weight as projection matrix (VMEM-resident)
    # b_ref / g_ref / beta_ref: (1, E_pad) f32, zero past the real E
    # o_ref:   (TM, E_pad)     lane-dense output tile
    acc = jnp.dot(p_ref[...], w_ref[...], preferred_element_type=jnp.float32)
    acc = acc + b_ref[...]                              # broadcast (1, E_pad)

    # LayerNorm over the real embed dim E (eps = 1e-5, PyTorch default).
    # Padded lanes of `acc` are exactly 0 (zero weight cols + zero bias), so
    # sum/E is the exact mean.  Variance uses the centered two-pass form for
    # numerical robustness; each padded lane contributes (0 - mean)^2, which
    # is removed by the static `pad_lanes * mean^2` correction.
    mean = jnp.sum(acc, axis=-1, keepdims=True) * inv_e
    centered = acc - mean
    sq = jnp.sum(centered * centered, axis=-1, keepdims=True)
    if pad_lanes:
        sq = sq - pad_lanes * (mean * mean)
    inv_std = lax.rsqrt(sq * inv_e + 1e-5)

    # Padded lanes end up exactly 0 (gamma = beta = 0 there).
    out = centered * inv_std * g_ref[...] + beta_ref[...]
    o_ref[...] = out.astype(o_ref.dtype)                # one full-width store


def _vmem_bytes(tm, k_pad, e_pad, in_item, out_item):
    # Conservative: count everything double-buffered.
    stream = 2 * tm * (k_pad * in_item + e_pad * out_item)
    resident = 2 * (k_pad * e_pad * in_item) + 2 * 3 * e_pad * 4
    return stream + resident


@functools.partial(
    jax.jit, static_argnames=("patch_size", "compute_dtype", "out_dtype"))
def _patch_embed_call(x, conv_w, conv_b, ln_g, ln_b, patch_size,
                      compute_dtype, out_dtype):
    B, C, H, W = x.shape
    ph, pw = patch_size
    Hp, Wp = H // ph, W // pw
    N = Hp * Wp
    E = conv_w.shape[0]
    K = C * ph * pw
    M = B * N

    in_dtype = jnp.dtype(compute_dtype) if compute_dtype is not None else x.dtype
    o_dtype = jnp.dtype(out_dtype) if out_dtype is not None else x.dtype
    in_item = jnp.dtype(in_dtype).itemsize
    out_item = jnp.dtype(o_dtype).itemsize

    # --- patchify (layout only; cast FIRST so the materialized intermediate
    # and its pad copy carry the narrow dtype) -------------------------------
    # (B,C,Hp,ph,Wp,pw) -> (B,Hp,Wp,C,ph,pw) -> (M, K); the (C,ph,pw)
    # flattening order matches nn.Conv2d's OIHW weight layout.
    xi = x.astype(in_dtype)
    patches = xi.reshape(B, C, Hp, ph, Wp, pw)
    patches = jnp.transpose(patches, (0, 2, 4, 1, 3, 5)).reshape(M, K)
    # TODO(synk): fuse this reorg into the kernel via (b, hp) grid axes over
    # NCHW x to drop the HBM round trip.

    # --- lane-dense padding: both K and E up to multiples of 128 ------------
    E_pad = _round_up(E, 128)
    K_pad = _round_up(K, 128)

    w_mat = conv_w.reshape(E, K).T                      # (K, E)
    w_mat = jnp.pad(w_mat, ((0, K_pad - K), (0, E_pad - E))).astype(in_dtype)
    b_row = jnp.pad(conv_b, (0, E_pad - E)).reshape(1, E_pad).astype(jnp.float32)
    g_row = jnp.pad(ln_g, (0, E_pad - E)).reshape(1, E_pad).astype(jnp.float32)
    beta_row = jnp.pad(ln_b, (0, E_pad - E)).reshape(1, E_pad).astype(jnp.float32)

    # --- tile M: biggest tile within a conservative VMEM budget -------------
    budget = 26 * 1024 * 1024          # headroom on v7x (64 MiB physical / TC)
    TM = 1024
    while TM > 16 and _vmem_bytes(TM, K_pad, E_pad, in_item, out_item) > budget:
        TM //= 2
    TM = min(TM, _round_up(M, 16))
    if M >= 32:
        # Ensure >= 2 grid steps so the "parallel" axis splits across both
        # v7x TensorCores even at small/medium M.
        TM = min(TM, _round_up(-(-M // 2), 16))
    M_pad = _round_up(M, TM)

    pad_m, pad_k = M_pad - M, K_pad - K
    if pad_m or pad_k:
        # Padded rows are all-zero -> acc = bias, finite LN stats; sliced off.
        # Zero K columns are inert (they multiply zero weight rows).
        patches = jnp.pad(patches, ((0, pad_m), (0, pad_k)))

    grid = (M_pad // TM,)
    vmem_est = _vmem_bytes(TM, K_pad, E_pad, in_item, out_item)
    # Explicit limit: v5e's scoped default is only 16 MiB (f32 TM=1024 needs
    # ~17 MiB); cap well below v7x's 64 MiB physical VMEM.
    vmem_limit = int(min(48 * 1024 * 1024,
                         max(16 * 1024 * 1024, vmem_est * 3 // 2 + (2 << 20))))

    cost = pl.CostEstimate(
        flops=2 * M_pad * K_pad * E_pad,
        transcendentals=M_pad,
        bytes_accessed=(patches.size * in_item + w_mat.size * in_item
                        + 3 * E_pad * 4 + M_pad * E_pad * out_item))

    kernel = functools.partial(_patch_embed_kernel,
                               inv_e=1.0 / E, pad_lanes=E_pad - E)

    out = pl.pallas_call(
        kernel,
        out_shape=jax.ShapeDtypeStruct((M_pad, E_pad), o_dtype),
        grid_spec=pltpu.PrefetchScalarGridSpec(
            num_scalar_prefetch=0,
            grid=grid,
            in_specs=[
                pl.BlockSpec((TM, K_pad), lambda i: (i, 0)),      # streamed
                pl.BlockSpec((K_pad, E_pad), lambda i: (0, 0)),   # VMEM-resident
                pl.BlockSpec((1, E_pad), lambda i: (0, 0)),
                pl.BlockSpec((1, E_pad), lambda i: (0, 0)),
                pl.BlockSpec((1, E_pad), lambda i: (0, 0)),
            ],
            out_specs=pl.BlockSpec((TM, E_pad), lambda i: (i, 0)),
        ),
        compiler_params=pltpu.CompilerParams(
            dimension_semantics=("parallel",),      # megacore-shardable on v7x
            vmem_limit_bytes=vmem_limit),
        cost_estimate=cost,
    )(patches, w_mat, b_row, g_row, beta_row)

    # Drop row / lane padding, restore (B, num_patches, embed_dim).  This is a
    # no-op for 128-aligned E; a consumer accepting the padded (M, E_pad)
    # layout could skip this extra HBM pass for odd embed dims.
    return out[:M, :E].reshape(B, N, E)


def patch_embed_forward(x, conv_w, conv_b, ln_g, ln_b, patch_size,
                        compute_dtype=jnp.bfloat16, out_dtype=None):
    """x: (B, C, H, W) NCHW like PyTorch. Returns (out, (Hp, Wp)).

    compute_dtype: dtype fed to the MXU (default bf16; f32 accumulation and
        f32 LayerNorm regardless).  Pass jnp.float32 for a bit-exact-ish path.
    out_dtype: stored output dtype (default: x.dtype).
    """
    B, C, H, W = x.shape
    ph, pw = patch_size
    assert H % ph == 0 and W % pw == 0
    out = _patch_embed_call(x, conv_w, conv_b, ln_g, ln_b,
                            patch_size=(ph, pw),
                            compute_dtype=compute_dtype,
                            out_dtype=out_dtype)
    return out, (H // ph, W // pw)


def _reference(x, conv_w, conv_b, ln_g, ln_b, patch_size):
    """Pure-JAX reference matching the PyTorch forward (for sanity check)."""
    ph, pw = patch_size
    y = lax.conv_general_dilated(
        x, conv_w, window_strides=(ph, pw), padding="VALID",
        dimension_numbers=("NCHW", "OIHW", "NCHW"))
    y = y + conv_b.reshape(1, -1, 1, 1)
    B, E, Hp, Wp = y.shape
    y = y.reshape(B, E, Hp * Wp).transpose(0, 2, 1)          # (B, N, E)
    mean = jnp.mean(y, axis=-1, keepdims=True)
    var = jnp.mean((y - mean) ** 2, axis=-1, keepdims=True)
    y = (y - mean) / jnp.sqrt(var + 1e-5) * ln_g + ln_b
    return y, (Hp, Wp)


if __name__ == "__main__":
    def _run_case(key, B, C, H, W, ph, pw, E):
        kx, kw, kb, kg, kbeta = jax.random.split(key, 5)
        x = jax.random.normal(kx, (B, C, H, W), dtype=jnp.float32)
        conv_w = jax.random.normal(kw, (E, C, ph, pw), dtype=jnp.float32) * 0.02
        conv_b = jax.random.normal(kb, (E,), dtype=jnp.float32) * 0.02
        ln_g = 1.0 + 0.1 * jax.random.normal(kg, (E,), dtype=jnp.float32)
        ln_b = 0.1 * jax.random.normal(kbeta, (E,), dtype=jnp.float32)

        ref, (Hr, Wr) = _reference(x, conv_w, conv_b, ln_g, ln_b, (ph, pw))

        # f32 feed / f32 out: strict check vs PyTorch-equivalent reference.
        out32, (Hp, Wp) = patch_embed_forward(
            x, conv_w, conv_b, ln_g, ln_b, (ph, pw),
            compute_dtype=jnp.float32, out_dtype=jnp.float32)
        out32 = jax.block_until_ready(out32)
        assert out32.shape == (B, (H // ph) * (W // pw), E)
        assert (Hp, Wp) == (Hr, Wr) == (H // ph, W // pw)
        assert jnp.allclose(out32, ref, atol=1e-4, rtol=1e-4), \
            float(jnp.max(jnp.abs(out32 - ref)))

        # Default path: bf16 feed, f32 accumulation / LayerNorm, f32 store.
        out_bf, _ = patch_embed_forward(x, conv_w, conv_b, ln_g, ln_b, (ph, pw))
        out_bf = jax.block_until_ready(out_bf)
        assert jnp.allclose(out_bf, ref, atol=5e-2, rtol=5e-2), \
            float(jnp.max(jnp.abs(out_bf - ref)))

        # bf16 feed + bf16 store (smallest HBM footprint).
        out_bb, _ = patch_embed_forward(x, conv_w, conv_b, ln_g, ln_b, (ph, pw),
                                        out_dtype=jnp.bfloat16)
        out_bb = jax.block_until_ready(out_bb)
        assert out_bb.dtype == jnp.bfloat16
        assert jnp.allclose(out_bb.astype(jnp.float32), ref,
                            atol=7e-2, rtol=7e-2)

    key = jax.random.PRNGKey(0)
    k1, k2 = jax.random.split(key)
    # Small config (img 16, patch 4, C=4, E=32): exercises K pad (64->128),
    # E pad (32->128), TM=16, grid=(2,) for megacore.
    _run_case(k1, B=2, C=4, H=16, W=16, ph=4, pw=4, E=32)
    # Non-16-aligned M (M=36 -> M_pad=64) + odd E=40: exercises row padding
    # and the padded-lane variance correction.
    _run_case(k2, B=1, C=3, H=24, W=24, ph=4, pw=4, E=40)

    print("KERNEL_OK")
</pallas_src>

<mosaic_0001>
module attributes {stable_mosaic.version = 11 : i64} {
  func.func @_patch_embed_kernel(%arg0: i32, %arg1: memref<16x128xf32, #tpu.memory_space<vmem>>, %arg2: memref<128x128xf32, #tpu.memory_space<vmem>>, %arg3: memref<1x128xf32, #tpu.memory_space<vmem>>, %arg4: memref<1x128xf32, #tpu.memory_space<vmem>>, %arg5: memref<1x128xf32, #tpu.memory_space<vmem>>, %arg6: memref<16x128xf32, #tpu.memory_space<vmem>>) attributes {dimension_semantics = [#tpu.dimension_semantics<parallel>], iteration_bounds = array<i64: 2>, scalar_prefetch = 0 : i64, scratch_operands = 0 : i64, tpu.core_type = #tpu.core_type<tc>, window_params = [{transform_indices = @transform_0, window_bounds = array<i64: 16, 128>}, {pipeline_mode = #tpu.pipeline_mode<synchronous>, transform_indices = @transform_1, window_bounds = array<i64: 128, 128>}, {pipeline_mode = #tpu.pipeline_mode<synchronous>, transform_indices = @transform_2, window_bounds = array<i64: 1, 128>}, {pipeline_mode = #tpu.pipeline_mode<synchronous>, transform_indices = @transform_3, window_bounds = array<i64: 1, 128>}, {pipeline_mode = #tpu.pipeline_mode<synchronous>, transform_indices = @transform_4, window_bounds = array<i64: 1, 128>}, {transform_indices = @transform_5, window_bounds = array<i64: 16, 128>}]} {
    %c0 = arith.constant 0 : index
    %c0_0 = arith.constant 0 : index
    %0 = vector.load %arg1[%c0, %c0_0] : memref<16x128xf32, #tpu.memory_space<vmem>>, vector<16x128xf32>
    %c0_1 = arith.constant 0 : index
    %c0_2 = arith.constant 0 : index
    %1 = vector.load %arg2[%c0_1, %c0_2] : memref<128x128xf32, #tpu.memory_space<vmem>>, vector<128x128xf32>
    %cst = arith.constant dense<0.000000e+00> : vector<16x128xf32>
    %2 = tpu.matmul %0, %1, %cst {dimension_numbers = #tpu.dot_dimension_numbers<[1], [0], [0], [1], [0, 0, 1, 1], [], []>} : vector<16x128xf32>, vector<128x128xf32>, vector<16x128xf32> -> vector<16x128xf32>
    %c0_3 = arith.constant 0 : index
    %c0_4 = arith.constant 0 : index
    %3 = vector.load %arg3[%c0_3, %c0_4] : memref<1x128xf32, #tpu.memory_space<vmem>>, vector<1x128xf32>
    %4 = vector.broadcast %3 : vector<1x128xf32> to vector<16x128xf32>
    %5 = arith.addf %2, %4 : vector<16x128xf32>
    %cst_5 = arith.constant dense<0.000000e+00> : vector<16xf32>
    %6 = vector.multi_reduction <add>, %5, %cst_5 [1] : vector<16x128xf32> to vector<16xf32>
    %7 = vector.shape_cast %6 : vector<16xf32> to vector<16x1xf32>
    %cst_6 = arith.constant 3.125000e-02 : f32
    %8 = vector.broadcast %cst_6 : f32 to vector<16x1xf32>
    %9 = arith.mulf %7, %8 : vector<16x1xf32>
    %10 = vector.broadcast %9 : vector<16x1xf32> to vector<16x128xf32>
    %11 = arith.subf %5, %10 : vector<16x128xf32>
    %12 = arith.mulf %11, %11 : vector<16x128xf32>
    %cst_7 = arith.constant dense<0.000000e+00> : vector<16xf32>
    %13 = vector.multi_reduction <add>, %12, %cst_7 [1] : vector<16x128xf32> to vector<16xf32>
    %14 = vector.shape_cast %13 : vector<16xf32> to vector<16x1xf32>
    %15 = arith.mulf %9, %9 : vector<16x1xf32>
    %cst_8 = arith.constant 9.600000e+01 : f32
    %16 = vector.broadcast %cst_8 : f32 to vector<16x1xf32>
    %17 = arith.mulf %16, %15 : vector<16x1xf32>
    %18 = arith.subf %14, %17 : vector<16x1xf32>
    %cst_9 = arith.constant 3.125000e-02 : f32
    %19 = vector.broadcast %cst_9 : f32 to vector<16x1xf32>
    %20 = arith.mulf %18, %19 : vector<16x1xf32>
    %cst_10 = arith.constant 9.99999974E-6 : f32
    %21 = vector.broadcast %cst_10 : f32 to vector<16x1xf32>
    %22 = arith.addf %20, %21 : vector<16x1xf32>
    %23 = math.rsqrt %22 : vector<16x1xf32>
    %24 = vector.broadcast %23 : vector<16x1xf32> to vector<16x128xf32>
    %25 = arith.mulf %11, %24 : vector<16x128xf32>
    %c0_11 = arith.constant 0 : index
    %c0_12 = arith.constant 0 : index
    %26 = vector.load %arg4[%c0_11, %c0_12] : memref<1x128xf32, #tpu.memory_space<vmem>>, vector<1x128xf32>
    %27 = vector.broadcast %26 : vector<1x128xf32> to vector<16x128xf32>
    %28 = arith.mulf %25, %27 : vector<16x128xf32>
    %c0_13 = arith.constant 0 : index
    %c0_14 = arith.constant 0 : index
    %29 = vector.load %arg5[%c0_13, %c0_14] : memref<1x128xf32, #tpu.memory_space<vmem>>, vector<1x128xf32>
    %30 = vector.broadcast %29 : vector<1x128xf32> to vector<16x128xf32>
    %31 = arith.addf %28, %30 : vector<16x128xf32>
    %c0_15 = arith.constant 0 : index
    %c0_16 = arith.constant 0 : index
    %32 = vector.load %arg6[%c0_15, %c0_16] : memref<16x128xf32, #tpu.memory_space<vmem>>, vector<16x128xf32>
    tpu.vector_store %arg6[%c0_15, %c0_16], %31 {strides = array<i32>} : memref<16x128xf32, #tpu.memory_space<vmem>>, vector<16x128xf32>,
    return
  }
  func.func @transform_0(%arg0: i32) -> (i32, i32) {
    %c0_i32 = arith.constant 0 : i32
    %c0_i32_0 = arith.constant 0 : i32
    return %arg0, %c0_i32 : i32, i32
  }
  func.func @transform_1(%arg0: i32) -> (i32, i32) {
    %c0_i32 = arith.constant 0 : i32
    %c0_i32_0 = arith.constant 0 : i32
    %c0_i32_1 = arith.constant 0 : i32
    return %c0_i32, %c0_i32_0 : i32, i32
  }
  func.func @transform_2(%arg0: i32) -> (i32, i32) {
    %c0_i32 = arith.constant 0 : i32
    %c0_i32_0 = arith.constant 0 : i32
    %c0_i32_1 = arith.constant 0 : i32
    return %c0_i32, %c0_i32_0 : i32, i32
  }
  func.func @transform_3(%arg0: i32) -> (i32, i32) {
    %c0_i32 = arith.constant 0 : i32
    %c0_i32_0 = arith.constant 0 : i32
    %c0_i32_1 = arith.constant 0 : i32
    return %c0_i32, %c0_i32_0 : i32, i32
  }
  func.func @transform_4(%arg0: i32) -> (i32, i32) {
    %c0_i32 = arith.constant 0 : i32
    %c0_i32_0 = arith.constant 0 : i32
    %c0_i32_1 = arith.constant 0 : i32
    return %c0_i32, %c0_i32_0 : i32, i32
  }
  func.func @transform_5(%arg0: i32) -> (i32, i32) {
    %c0_i32 = arith.constant 0 : i32
    %c0_i32_0 = arith.constant 0 : i32
    return %arg0, %c0_i32 : i32, i32
  }
}

</mosaic_0001>

<bundles_post_ra>
// kernel: _patch_embed_call.1
= control target key start
LH: loop header
LB: loop body
LE: loop exit
PB: predicated region body
PF: predicated region fallthrough
CT: control target
= control target key end

     0   :  { %10 = vsyncpa [#allocation3], 0  ;;  %s852_s0 = inlined_call_operand.vmem [shape: f32[32,128], index: 0, kind: input, shape index: {}]   ;;  %s853_s1 = inlined_call_operand.vmem [shape: f32[128,128], index: 1, kind: input, shape index: {}]   ;;  %s854_s2 = inlined_call_operand.vmem [shape: f32[1,128], index: 2, kind: input, shape index: {}]   ;;  %s855_s3 = inlined_call_operand.vmem [shape: f32[1,128], index: 3, kind: input, shape index: {}]   ;;  %s856_s4 = inlined_call_operand.vmem [shape: f32[1,128], index: 4, kind: input, shape index: {}]   ;;  %s857_s5 = inlined_call_operand.hbm [shape: f32[32,128], index: 5, kind: output, shape index: {}]  }
   0x1   :  { %12 = vsyncpa [#allocation3 + $0x1], 0  ;;  %s693_s18 = smov 0   ;;  %s695_s19 = smov 0  }
   0x2   :  { %s697_s20 = smov 0   ;;  %s699_s21 = smov 0  }
   0x3 LB: > { %s714_s22 = sadd.s32 4294967295, %s658_s21   ;;  %s450_s23 = sadd.s32 4294967294, %s658_s21   ;;  %s658_s21 = sphi %s699_s21, %s863_s21   ;;  %s654_s20 = sphi %s697_s20, %s862_s20   ;;  %s650_s19 = sphi %s695_s19, %s861_s19   ;;  %s646_s18 = sphi %s693_s18, %s860_s18  }
   0x4   : > { %s718_s24 = sadd.s32 1, %s658_s21   ;;  %s135_s25 = sadd.s32 1, %s654_s20 }
   0x5   : > { %s132_s26 = ssub.s32 %s658_s21, %s718_s24  ;;  %p145_p0 = scmp.ne.s32.totalorder %s654_s20, %s650_s19 }
   0x6   : > { %p133_p1 = scmp.eq.s32.totalorder %s132_s26, 0  ;;  %p146_p2 = scmp.eq.s32.totalorder %s714_s22, 1 }
   0x7   : > { %p151_p3 = scmp.ne.s32.totalorder %s650_s19, %s646_s18  ;;  %p152_p4 = scmp.eq.s32.totalorder %s450_s23, 1 }
   0x8   : > { %s729_s27 = scalar_select %p133_p1, %s654_s20, %s135_s25  }
   0x9   : > { %p731_p5 = por %p146_p2, %p145_p0  ;;  %p735_p6 = por %p152_p4, %p151_p3 }
   0xa   : > { %p453_p7 = scmp.ge.s32.totalorder %s658_s21, 1  ;;  %p191_p8 = scmp.lt.s32.totalorder %s658_s21, 3 }
   0xc   : > { %p192_p9 = pnand %p453_p7, %p191_p8 }
   0xd   : > { %v228_v0 = vld [vmem:[%s853_s1] sm:$0xff] (!%p192_p9)  ;;  %v229_v1 = vld [vmem:[%s853_s1 + $0x8] sm:$0xff] (!%p192_p9)  ;;  %v230_v2 = vld [vmem:[%s853_s1 + $0x10] sm:$0xff] (!%p192_p9)  ;;  %s455_s11 = sshll.u32 (!%p192_p9), %s714_s22, 1 }
   0xe   : > { %195 = sbr.rel (%p192_p9) target bundleno = 595 (0x253), region = 40  ;;  %v519_v3 = vpack.c.bf16 (!%p192_p9), %v229_v1, %v228_v0  ;;  %v231_v4 = vld [vmem:[%s853_s1 + $0x18] sm:$0xff] (!%p192_p9)  ;;  %p220_p10 = scmp.lt.s32.totalorder (!%p192_p9), %s455_s11, 3  ;;  %v232_v6 = vld [vmem:[%s853_s1 + $0x20] sm:$0xff] (!%p192_p9)  ;;  %v233_v7 = vld [vmem:[%s853_s1 + $0x28] sm:$0xff] (!%p192_p9) }
   0xf   : > { %v523_v5 = vpack.c.bf16 (!%p192_p9), %v231_v4, %v230_v2  ;;  %v527_v8 = vpack.c.bf16 (!%p192_p9), %v233_v7, %v232_v6  ;;  %v234_v9 = vld [vmem:[%s853_s1 + $0x30] sm:$0xff] (!%p192_p9)  ;;  %v235_v10 = vld [vmem:[%s853_s1 + $0x38] sm:$0xff] (!%p192_p9)  ;;  %v236_v13 = vld [vmem:[%s853_s1 + $0x40] sm:$0xff] (!%p192_p9) }
  0x10   : > { %520 = vmatprep.subr.bf16.mxu0 (!%p192_p9), %v519_v3  ;;  %v531_v12 = vpack.c.bf16 (!%p192_p9), %v235_v10, %v234_v9  ;;  %v237_v14 = vld [vmem:[%s853_s1 + $0x48] sm:$0xff] (!%p192_p9)  ;;  %v238_v16 = vld [vmem:[%s853_s1 + $0x50] sm:$0xff] (!%p192_p9)  ;;  %v239_v17 = vld [vmem:[%s853_s1 + $0x58] sm:$0xff] (!%p192_p9) }
  0x11   : > { %522 = vmatpush3.bf16.msra.mxu0 (!%p192_p9), %v519_v3  ;;  %v535_v15 = vpack.c.bf16 (!%p192_p9), %v237_v14, %v236_v13  ;;  %v539_v18 = vpack.c.bf16 (!%p192_p9), %v239_v17, %v238_v16  ;;  %v240_v19 = vld [vmem:[%s853_s1 + $0x60] sm:$0xff] (!%p192_p9)  ;;  %v241_v20 = vld [vmem:[%s853_s1 + $0x68] sm:$0xff] (!%p192_p9)  ;;  %v242_v22 = vld [vmem:[%s853_s1 + $0x70] sm:$0xff] (!%p192_p9) }
  0x12   : > { %524 = vmatprep.subr.bf16.mxu0 (!%p192_p9), %v523_v5  ;;  %v543_v21 = vpack.c.bf16 (!%p192_p9), %v241_v20, %v240_v19  ;;  %v243_v23 = vld [vmem:[%s853_s1 + $0x78] sm:$0xff] (!%p192_p9)  ;;  %v457_v26 = vld [vmem:[%s854_s2] ss:$0 sm:$0xff] (!%p192_p9) }
  0x13   : > { %v547_v24 = vpack.c.bf16 (!%p192_p9), %v243_v23, %v242_v22  ;;  %v458_v52 = vld [vmem:[%s855_s3] ss:$0 sm:$0xff] (!%p192_p9) }
  0x14   : > { %v459_v54 = vld [vmem:[%s856_s4] ss:$0 sm:$0xff] (!%p192_p9) }
  0x15   : > { %s865_s11 = smov (!%p220_p10, %s455_s11), 3  ;;  %526 = vmatpush3.bf16.msra.mxu0 %v523_v5 }
  0x16   : > { %s456_s23 = sshll.u32 %s865_s11, 3  ;;  %528 = vmatprep.subr.bf16.mxu0 %v527_v8 }
  0x17   : > { %s223_s9 = scalar_lea.vmem %s852_s0, %s456_s23  ;;  %s465_s23 = sshll.u32 %s714_s22, 8 }
  0x18   : > { %v226_v11 = vld [vmem:[%s223_s9] sm:$0xff]  ;;  %v227_v25 = vld [vmem:[%s223_s9 + $0x8] sm:$0xff]  ;;  %s216_s9 = sand.u32 1, %s650_s19   ;;  %s807_s7 = scalar_lea.hbm %s857_s5, %s465_s23 }
  0x19   : > { %516 = vmatprep.mubr.f32.mxu0 %v226_v11  ;;  %530 = vmatpush3.bf16.msra.mxu0 %v527_v8  ;;  %s454_s15 = sshll.u32 %s216_s9, 4  ;;  %s811_s8 = scalar_lea.sflag [#allocation3], %s216_s9 }
  0x1a   : > { %532 = vmatprep.subr.bf16.mxu0 %v531_v12  ;;  %s218_s25 = scalar_lea.vmem [#allocation2], %s454_s15  ;;  %s660_s22 = smov [#allocation2]  }
  0x1b   : > { %s388_s26 = sshll.u32 %s218_s25, 4  ;;  %s600_s12 = sshll.u32 %s660_s22, 4  ;;  %s809_s26 = int_to_ptr.vmem [resolvable:$true] %s388_s26  ;;  %s601_s12 = int_to_ptr.vmem [resolvable:$false] %s600_s12 }
  0x1c   : > { %s596_s10 = scalar_lea.vmem %s809_s26, 256  ;;  %s602_s11 = scalar_lea.vmem %s601_s12, 512 }
  0x1d   : > { %534 = vmatpush3.bf16.msra.mxu0 %v531_v12  ;;  %p597_p11 = scmp.ne.s32.totalorder %s809_s26, %s596_s10  ;;  %p603_p0 = scmp.lt.s32.totalorder %s809_s26, %s601_s12 }
  0x1e   : > { %536 = vmatprep.subr.bf16.mxu0 %v535_v15  ;;  %p604_p1 = scmp.lt.s32.totalorder %s602_s11, %s596_s10 }
  0x1f   : > { %p598_p12 = pnand %p597_p11, %p731_p5 }
  0x20   : > { %p605_p2 = por %p604_p1, %p603_p0 }
  0x21   : > { %538 = vmatpush3.bf16.msra.mxu0 %v535_v15  ;;  %p599_p13 = pneg %p598_p12 }
  0x22   : > { %540 = vmatprep.subr.bf16.mxu0 %v539_v18 }
  0x23   : > { %p606_p3 = pnand %p605_p2, %p599_p13 }
  0x25   : > { %542 = vmatpush3.bf16.msra.mxu0 %v539_v18 }
  0x26   : > { %544 = vmatprep.subr.bf16.mxu0 %v543_v21 }
  0x29   : > { %546 = vmatpush3.bf16.msra.mxu0 %v543_v21 }
  0x2a   : > { %548 = vmatprep.subr.bf16.mxu0 %v547_v24 }
  0x2d   : > { %550 = vmatpush3.bf16.msra.mxu0 %v547_v24 }
  0x30   : > { %517 = vmatmul.mubr.f32.vlgmr.msra.gmra.mrb[0].mxu0 %v227_v25 }
 0x103   : > { %v518_v27 = vpop.f32.mrb[0].mxu0 }
 0x104   : > { %v317_v28 = vpop.f32.mrb[1].mxu0  ;;  %v323_v30 = vadd.f32 %v518_v27, %v457_v26 }
 0x105   : > { %v318_v29 = vadd.f32 %v457_v26, %v317_v28 }
 0x107   : > { %326 = vadd.xlane.f32.xlu0 %v318_v29 }
 0x10b   : > { %328 = vadd.xlane.f32.xlu0 %v323_v30 }
 0x194   : > { %v327_v31 = vpop.xlane.xlu0 %326 }
 0x195   : > { %v330_v32 = vmul.f32 0.03125, %v327_v31 }
 0x197   : > { %v332_v33 = vsub.f32 %v318_v29, %v330_v32  ;;  %v340_v39 = vmul.f32 %v330_v32, %v330_v32 }
 0x198   : > { %v329_v34 = vpop.xlane.xlu0 %328 }
 0x199   : > { %v331_v35 = vmul.f32 0.03125, %v329_v34  ;;  %v334_v36 = vmul.f32 %v332_v33, %v332_v33  ;;  %v342_v41 = vmul.f32 96.0, %v340_v39 }
 0x19b   : > { %v333_v37 = vsub.f32 %v323_v30, %v331_v35  ;;  %336 = vadd.xlane.f32.xlu1 %v334_v36  ;;  %v341_v40 = vmul.f32 %v331_v35, %v331_v35 }
 0x19d   : > { %v335_v38 = vmul.f32 %v333_v37, %v333_v37  ;;  %v343_v44 = vmul.f32 96.0, %v341_v40 }
 0x19f   : > { %338 = vadd.xlane.f32.xlu1 %v335_v38 }
 0x228   : > { %v337_v42 = vpop.xlane.xlu1 %336 }
 0x229   : > { %v344_v43 = vsub.f32 %v337_v42, %v342_v41 }
 0x22b   : > { %v346_v45 = vmul.f32 0.03125, %v344_v43 }
 0x22c   : > { %v339_v46 = vpop.xlane.xlu1 %338 }
 0x22d   : > { %v348_v47 = vadd.f32 1e-05, %v346_v45  ;;  %v345_v48 = vsub.f32 %v339_v46, %v343_v44 }
 0x22f   : > { %592 = vrsqrt.f32 %v348_v47  ;;  %v347_v49 = vmul.f32 0.03125, %v345_v48 }
 0x231   : > { %v349_v50 = vadd.f32 1e-05, %v347_v49 }
 0x233   : > { %594 = vrsqrt.f32 %v349_v50 }
 0x239   : > { %v593_v51 = vpop.eup %592 }
 0x23a   : > { %v352_v53 = vmul.f32 %v593_v51, %v332_v33 }
 0x23c   : > { %v361_v55 = vmul.f32 %v458_v52, %v352_v53 }
 0x23d   : > { %v595_v56 = vpop.eup %594 }
 0x23e   : > { %v353_v57 = vmul.f32 %v595_v56, %v333_v37  ;;  %v370_v58 = vadd.f32 %v459_v54, %v361_v55 }
 0x240   : > { %v362_v59 = vmul.f32 %v458_v52, %v353_v57  ;;  %372 = vst [vmem:[%s218_s25] sm:$0xff] %v370_v58 }
 0x242   : > { %v371_v60 = vadd.f32 %v459_v54, %v362_v59 }
 0x244   : > { %373 = vst [vmem:[%s218_s25 + $0x8] sm:$0xff] %v371_v60 }
 0x245   : > { %609 = shalt.err (!%p606_p3)
}
 0x246   : > { %s610_s9 = scalar_lea.hbm %s807_s7, 256  ;;  %s614_s15 = scalar_lea.hbm %s857_s5, 512 }
 0x247   : > { %p611_p4 = scmp.ne.s32.totalorder %s807_s7, %s610_s9  ;;  %p615_p9 = scmp.lt.u32.totalorder %s807_s7, %s857_s5 }
 0x248   : > { %p616_p10 = scmp.lt.u32.totalorder %s614_s15, %s610_s9  ;;  %p618_p12 = scmp.lt.u32.totalorder %s610_s9, %s807_s7 }
 0x249   : > { %p612_p7 = pnand %p611_p4, %p731_p5 }
 0x24a   : > { %p617_p11 = por %p616_p10, %p615_p9 }
 0x24b   : > { %p613_p8 = pneg %p612_p7 }
 0x24c   : > { %p619_p13 = por %p618_p12, %p617_p11 }
 0x24e   : > { %p620_p0 = pnand %p619_p13, %p613_p8 }
 0x250   : > { %623 = shalt.err (!%p620_p0)
}
 0x251   : > { %s661_s23 = smov 128   ;;  %s662_s25 = smov 8  }
 0x252   : > { %551 = dma.vmem_to_hbm [thread:$0]  (%p731_p5), %s809_s26, 256, %s807_s7, %s811_s8, %s661_s23, %s661_s23, %s662_s25  }
 0x253 PF: > { %p557_p1 = scmp.ge.s32.totalorder %s658_s21, 2  ;;  %s403_s30 = sand.u32 1, %s646_s18  }
 0x254   : > { %s404_s6 = scalar_lea.sflag [#allocation3], %s403_s30 }
 0x255   : > { %p554_p2 = pnand %p557_p1, %p735_p6 }
 0x257   : > { %641 = dma.done.wait (!%p554_p2), %s404_s6, 256  }
 0x258   : > { %643 = vsyncadd (!%p554_p2), %s404_s6, 4294967040  ;;  %p15_p3 = scmp.ge.s32.totalorder %s718_s24, 4   ;;  %s860_s18 = smov %s650_s19 }
 0x259   : > { %s861_s19 = smov %s654_s20  ;;  %s862_s20 = smov %s729_s27 }
 0x25a   : > { %s863_s21 = smov %s718_s24  ;;  %17 = sbr.rel (!%p15_p3) target bundleno = 3 (0x3), region = 75 }
 0x261   :  { %409 = vsyncpa [#allocation3], 1 }
 0x262   :  { %411 = vsyncpa [#allocation3 + $0x1], 1 }

</bundles_post_ra>
